<compile_context>
chip_gen: v5e
topology: v5e:2x2
jax: 0.10.0
libtpu: 0.0.40
codegen_flags: <defaults>
</compile_context>

<pallas_src>
import functools

import jax
import jax.numpy as jnp
from jax.experimental import pallas as pl
from jax.experimental.pallas import tpu as pltpu


VMEM_LIMIT_BYTES = 32 * 1024 * 1024     # safe on v5e/v6e (128 MiB phys) and v7x (64 MiB)
FUSED_VMEM_BUDGET = 20 * 1024 * 1024    # whole-slab fused path fit check (headroom kept)
TILE_BYTES_TARGET = 2 * 1024 * 1024     # two-pass path: ~2 MiB input blocks
MAX_TILE_LANES = 8192                   # bounds the unrolled per-tile chunk loop (64 chunks)


# ----------------------------- Pallas kernels -----------------------------

def _attention_scale(y, w1_ref, b1_ref, w2_ref, b2_ref):
    """s = sigmoid(W2 relu(W1 y + b1) + b2) for a single batch element.

    y: (C, 1).  w1 (C, Cr) = torch_W1.T, w2 (C, Cr) = torch_W2.  Pure VPU
    broadcast-multiplies + XLU reduces; the problem is far too small for the MXU.
    """
    h = jnp.maximum(
        jnp.sum(y * w1_ref[...], axis=0, keepdims=True) + b1_ref[...], 0.0)   # (1, Cr)
    s = jax.nn.sigmoid(
        jnp.sum(h * w2_ref[...], axis=1, keepdims=True) + b2_ref[...])        # (C, 1)
    return s


def _cca_fused_kernel(x_ref, w1_ref, b1_ref, w2_ref, b2_ref, o_ref, *, hw_total):
    """Single-pass CCA for one batch element.  x_ref/o_ref: (1, C, HWp)."""
    xt = x_ref[0].astype(jnp.float32)                         # (C, HWp)
    inv_hw = 1.0 / hw_total
    mean = jnp.sum(xt, axis=1, keepdims=True) * inv_hw        # padded zeros are exact
    # Single-pass variance E[x^2] - mean^2 (clamped).  Note: can lose precision vs the
    # two-pass PyTorch stdv when |mean| >> std; acceptable for inference.
    var = jnp.maximum(jnp.sum(xt * xt, axis=1, keepdims=True) * inv_hw - mean * mean, 0.0)
    y = jnp.sqrt(var) + mean                                  # stdv + avg_pool, (C, 1)
    s = _attention_scale(y, w1_ref, b1_ref, w2_ref, b2_ref)   # (C, 1)
    o_ref[0] = (xt * s).astype(o_ref.dtype)


def _cca_stats_kernel(x_ref, w1_ref, b1_ref, w2_ref, b2_ref, s_ref,
                      sum_acc, sq_acc, *, hw_total):
    """Two-pass path, pass 1: per-channel stats + attention MLP.

    x_ref: (1, C, thw) spatial tile (native dtype).  sum_acc/sq_acc: (C, 128) f32.
    s_ref: (1, C, 1) written at the last HW tile.
    """
    t = pl.program_id(1)

    @pl.when(t == 0)
    def _():
        sum_acc[...] = jnp.zeros_like(sum_acc)
        sq_acc[...] = jnp.zeros_like(sq_acc)

    thw = x_ref.shape[2]
    # Steady-state loop does only lane-aligned (C, 128) VPU adds; the cross-lane
    # (128 -> 1) XLU reduce is deferred to the last-tile epilogue.
    ps = jnp.zeros(sum_acc.shape, jnp.float32)
    pq = jnp.zeros(sq_acc.shape, jnp.float32)
    for c0 in range(0, thw, 128):
        chunk = x_ref[0, :, c0:c0 + 128].astype(jnp.float32)   # (C, 128)
        ps = ps + chunk
        pq = pq + chunk * chunk
    sum_acc[...] += ps
    sq_acc[...] += pq

    @pl.when(t == pl.num_programs(1) - 1)
    def _():
        inv_hw = 1.0 / hw_total
        mean = jnp.sum(sum_acc[...], axis=1, keepdims=True) * inv_hw          # (C, 1)
        var = jnp.maximum(
            jnp.sum(sq_acc[...], axis=1, keepdims=True) * inv_hw - mean * mean, 0.0)
        y = jnp.sqrt(var) + mean
        s_ref[0] = _attention_scale(y, w1_ref, b1_ref, w2_ref, b2_ref)


def _cca_scale_kernel(x_ref, s_ref, o_ref):
    """Two-pass path, pass 2: out = x * s, lane-dense, native-dtype I/O."""
    o_ref[...] = (x_ref[...].astype(jnp.float32) * s_ref[...]).astype(o_ref.dtype)


# ----------------------------- wrapper -----------------------------

def _choose_hw_tile(hw_pad, c, itemsize):
    """Largest multiple of 128 that divides hw_pad, bounded by a ~2 MiB VMEM target
    and by MAX_TILE_LANES (keeps the unrolled chunk loop small)."""
    cap = max(128, min(MAX_TILE_LANES,
                       (TILE_BYTES_TARGET // max(c * itemsize, 1)) // 128 * 128))
    thw = min(cap, hw_pad)
    while hw_pad % thw != 0:
        thw -= 128
    return thw


def cca_forward(x_nchw, params, *, fused_budget_bytes=FUSED_VMEM_BUDGET):
    B, C, H, W = x_nchw.shape
    HW = H * W
    HWp = ((HW + 127) // 128) * 128
    in_dtype = x_nchw.dtype
    isz = jnp.dtype(in_dtype).itemsize
    Cr = params["w1"].shape[1]

    x3 = x_nchw.reshape(B, C, HW)
    if HWp != HW:
        # Zero padding is exact for the stats (adds 0 to sum/sumsq; divisor is true HW)
        # and padded output lanes are sliced off below.
        x3 = jnp.pad(x3, ((0, 0), (0, 0), (0, HWp - HW)))

    wbytes = (2 * C * Cr + Cr + C) * 4
    weight_args = (params["w1"], params["b1"], params["w2"], params["b2"])
    weight_specs = [
        pl.BlockSpec((C, Cr), lambda b, t: (0, 0)),
        pl.BlockSpec((1, Cr), lambda b, t: (0, 0)),
        pl.BlockSpec((C, Cr), lambda b, t: (0, 0)),
        pl.BlockSpec((C, 1), lambda b, t: (0, 0)),
    ]

    # ---- fused single-pass path: whole (C, HWp) slab resident in VMEM ----
    # Budget: 2x double-buffered input + 2x double-buffered output (native dtype)
    # plus ~2 full-size f32 temporaries inside the kernel, plus slack.
    fused_est = C * HWp * (4 * isz + 8) + (1 << 20)
    if fused_est <= fused_budget_bytes:
        fused_specs = [pl.BlockSpec((1, C, HWp), lambda b: (b, 0, 0))] + [
            pl.BlockSpec((C, Cr), lambda b: (0, 0)),
            pl.BlockSpec((1, Cr), lambda b: (0, 0)),
            pl.BlockSpec((C, Cr), lambda b: (0, 0)),
            pl.BlockSpec((C, 1), lambda b: (0, 0)),
        ]
        out3 = pl.pallas_call(
            functools.partial(_cca_fused_kernel, hw_total=float(HW)),
            out_shape=jax.ShapeDtypeStruct((B, C, HWp), in_dtype),
            grid=(B,),
            in_specs=fused_specs,
            out_specs=pl.BlockSpec((1, C, HWp), lambda b: (b, 0, 0)),
            compiler_params=pltpu.CompilerParams(
                dimension_semantics=("parallel",),
                vmem_limit_bytes=VMEM_LIMIT_BYTES),
            cost_estimate=pl.CostEstimate(
                flops=int(5 * B * C * HWp),
                transcendentals=int(B * (2 * C + Cr)),
                bytes_accessed=int(2 * B * C * HWp * isz + wbytes)),
        )(x3, *weight_args)
        return out3[:, :, :HW].reshape(B, C, H, W)

    # ---- fallback: tiled two-pass path ----
    thw = _choose_hw_tile(HWp, C, isz)
    T = HWp // thw

    s = pl.pallas_call(
        functools.partial(_cca_stats_kernel, hw_total=float(HW)),
        out_shape=jax.ShapeDtypeStruct((B, C, 1), jnp.float32),
        grid=(B, T),
        in_specs=[pl.BlockSpec((1, C, thw), lambda b, t: (b, 0, t))] + weight_specs,
        out_specs=pl.BlockSpec((1, C, 1), lambda b, t: (b, 0, 0)),
        scratch_shapes=[pltpu.VMEM((C, 128), jnp.float32),
                        pltpu.VMEM((C, 128), jnp.float32)],
        compiler_params=pltpu.CompilerParams(
            dimension_semantics=("parallel", "arbitrary"),
            vmem_limit_bytes=VMEM_LIMIT_BYTES),
        cost_estimate=pl.CostEstimate(
            flops=int(3 * B * C * HWp),
            transcendentals=int(B * (2 * C + Cr)),
            bytes_accessed=int(B * C * HWp * isz + B * C * 4 + wbytes)),
    )(x3, *weight_args)

    out3 = pl.pallas_call(
        _cca_scale_kernel,
        out_shape=jax.ShapeDtypeStruct((B, C, HWp), in_dtype),
        grid=(B, T),
        in_specs=[
            pl.BlockSpec((1, C, thw), lambda b, t: (b, 0, t)),
            pl.BlockSpec((1, C, 1), lambda b, t: (b, 0, 0)),
        ],
        out_specs=pl.BlockSpec((1, C, thw), lambda b, t: (b, 0, t)),
        compiler_params=pltpu.CompilerParams(
            dimension_semantics=("parallel", "parallel"),
            vmem_limit_bytes=VMEM_LIMIT_BYTES),
        cost_estimate=pl.CostEstimate(
            flops=int(B * C * HWp),
            transcendentals=0,
            bytes_accessed=int(2 * B * C * HWp * isz + B * C * 4)),
    )(x3, s)

    return out3[:, :, :HW].reshape(B, C, H, W)


# ----------------------------- params & reference -----------------------------

def init_params(key, nf, sf=16):
    """Deterministic synthetic params, stored in the kernel's preferred layouts."""
    cr = max(nf // sf, 1)
    k1, k2, k3, k4 = jax.random.split(key, 4)
    s1 = 1.0 / jnp.sqrt(jnp.float32(nf))
    s2 = 1.0 / jnp.sqrt(jnp.float32(cr))
    return {
        "w1": jax.random.normal(k1, (nf, cr), jnp.float32) * s1,   # = torch W1.T  (C, Cr)
        "b1": jax.random.normal(k2, (1, cr), jnp.float32) * s1,
        "w2": jax.random.normal(k3, (nf, cr), jnp.float32) * s2,   # = torch W2    (C, Cr)
        "b2": jax.random.normal(k4, (nf, 1), jnp.float32) * s2,
    }


def ref_forward(x_nchw, params):
    """Pure-JAX reference matching the PyTorch CCA_Module semantics."""
    x = x_nchw.astype(jnp.float32)
    mean = x.mean(axis=(2, 3), keepdims=True)                       # (B, C, 1, 1)
    var = ((x - mean) ** 2).mean(axis=(2, 3), keepdims=True)
    y = jnp.sqrt(var) + mean                                        # stdv + avg_pool
    yv = y[..., 0, 0]                                               # (B, C)
    h = jnp.maximum(yv @ params["w1"] + params["b1"].reshape(1, -1), 0.0)     # (B, Cr)
    s = jax.nn.sigmoid(h @ params["w2"].T + params["b2"].reshape(1, -1))      # (B, C)
    return x * s[:, :, None, None]


# ----------------------------- main -----------------------------

if __name__ == "__main__":
    B, C, H, W, sf = 2, 64, 16, 16, 16     # C must be >= sf for the squeeze FC
    key = jax.random.PRNGKey(0)
    kx, kp = jax.random.split(key)
    x = jax.random.normal(kx, (B, C, H, W), jnp.float32)
    params = init_params(kp, C, sf)
    ref = ref_forward(x, params)

    # Fused single-pass path (default at this size).
    out = jax.jit(lambda xx: cca_forward(xx, params))(x)
    jax.block_until_ready(out)
    assert out.shape == (B, C, H, W), out.shape
    err = float(jnp.abs(out - ref).max())
    assert err < 1e-4, err

    # Tiled two-pass fallback path (forced by a zero fusion budget).
    out2 = jax.jit(lambda xx: cca_forward(xx, params, fused_budget_bytes=0))(x)
    jax.block_until_ready(out2)
    err2 = float(jnp.abs(out2 - ref).max())
    assert err2 < 1e-4, err2

    # Native-dtype (bf16) I/O path: halves HBM traffic; output stays bf16.
    xb = x.astype(jnp.bfloat16)
    outb = jax.jit(lambda xx: cca_forward(xx, params))(xb)
    jax.block_until_ready(outb)
    assert outb.dtype == jnp.bfloat16
    refb = ref_forward(xb.astype(jnp.float32), params)
    errb = float(jnp.abs(outb.astype(jnp.float32) - refb).max())
    assert errb < 5e-2, errb

    print("KERNEL_OK")
</pallas_src>

<mosaic_0001>
module attributes {stable_mosaic.version = 11 : i64} {
  func.func @_cca_fused_kernel(%arg0: i32, %arg1: memref<1x64x256xf32, #tpu.memory_space<vmem>>, %arg2: memref<64x4xf32, #tpu.memory_space<vmem>>, %arg3: memref<1x4xf32, #tpu.memory_space<vmem>>, %arg4: memref<64x4xf32, #tpu.memory_space<vmem>>, %arg5: memref<64x1xf32, #tpu.memory_space<vmem>>, %arg6: memref<1x64x256xf32, #tpu.memory_space<vmem>>) attributes {dimension_semantics = [#tpu.dimension_semantics<parallel>], iteration_bounds = array<i64: 2>, scalar_prefetch = 0 : i64, scratch_operands = 0 : i64, tpu.core_type = #tpu.core_type<tc>, window_params = [{transform_indices = @transform_0, window_bounds = array<i64: 1, 64, 256>}, {pipeline_mode = #tpu.pipeline_mode<synchronous>, transform_indices = @transform_1, window_bounds = array<i64: 64, 4>}, {pipeline_mode = #tpu.pipeline_mode<synchronous>, transform_indices = @transform_2, window_bounds = array<i64: 1, 4>}, {pipeline_mode = #tpu.pipeline_mode<synchronous>, transform_indices = @transform_3, window_bounds = array<i64: 64, 4>}, {pipeline_mode = #tpu.pipeline_mode<synchronous>, transform_indices = @transform_4, window_bounds = array<i64: 64, 1>}, {transform_indices = @transform_5, window_bounds = array<i64: 1, 64, 256>}]} {
    %c0 = arith.constant 0 : index
    %c0_0 = arith.constant 0 : index
    %c0_1 = arith.constant 0 : index
    %0 = vector.load %arg1[%c0, %c0_0, %c0_1] : memref<1x64x256xf32, #tpu.memory_space<vmem>>, vector<1x64x256xf32>
    %1 = vector.shape_cast %0 : vector<1x64x256xf32> to vector<64x256xf32>
    %cst = arith.constant dense<0.000000e+00> : vector<64xf32>
    %2 = vector.multi_reduction <add>, %1, %cst [1] : vector<64x256xf32> to vector<64xf32>
    %3 = vector.shape_cast %2 : vector<64xf32> to vector<64x1xf32>
    %cst_2 = arith.constant 3.906250e-03 : f32
    %4 = vector.broadcast %cst_2 : f32 to vector<64x1xf32>
    %5 = arith.mulf %3, %4 : vector<64x1xf32>
    %6 = arith.mulf %1, %1 : vector<64x256xf32>
    %cst_3 = arith.constant dense<0.000000e+00> : vector<64xf32>
    %7 = vector.multi_reduction <add>, %6, %cst_3 [1] : vector<64x256xf32> to vector<64xf32>
    %8 = vector.shape_cast %7 : vector<64xf32> to vector<64x1xf32>
    %cst_4 = arith.constant 3.906250e-03 : f32
    %9 = vector.broadcast %cst_4 : f32 to vector<64x1xf32>
    %10 = arith.mulf %8, %9 : vector<64x1xf32>
    %11 = arith.mulf %5, %5 : vector<64x1xf32>
    %12 = arith.subf %10, %11 : vector<64x1xf32>
    %cst_5 = arith.constant 0.000000e+00 : f32
    %13 = vector.broadcast %cst_5 : f32 to vector<64x1xf32>
    %14 = arith.maximumf %12, %13 : vector<64x1xf32>
    %15 = math.sqrt %14 : vector<64x1xf32>
    %16 = arith.addf %15, %5 : vector<64x1xf32>
    %c0_6 = arith.constant 0 : index
    %c0_7 = arith.constant 0 : index
    %17 = vector.load %arg2[%c0_6, %c0_7] : memref<64x4xf32, #tpu.memory_space<vmem>>, vector<64x4xf32>
    %18 = vector.broadcast %16 : vector<64x1xf32> to vector<64x4xf32>
    %19 = arith.mulf %18, %17 : vector<64x4xf32>
    %cst_8 = arith.constant dense<0.000000e+00> : vector<4xf32>
    %20 = vector.multi_reduction <add>, %19, %cst_8 [0] : vector<64x4xf32> to vector<4xf32>
    %21 = vector.shape_cast %20 : vector<4xf32> to vector<1x4xf32>
    %c0_9 = arith.constant 0 : index
    %c0_10 = arith.constant 0 : index
    %22 = vector.load %arg3[%c0_9, %c0_10] : memref<1x4xf32, #tpu.memory_space<vmem>>, vector<1x4xf32>
    %23 = arith.addf %21, %22 : vector<1x4xf32>
    %cst_11 = arith.constant 0.000000e+00 : f32
    %24 = vector.broadcast %cst_11 : f32 to vector<1x4xf32>
    %25 = arith.maximumf %23, %24 : vector<1x4xf32>
    %c0_12 = arith.constant 0 : index
    %c0_13 = arith.constant 0 : index
    %26 = vector.load %arg4[%c0_12, %c0_13] : memref<64x4xf32, #tpu.memory_space<vmem>>, vector<64x4xf32>
    %27 = vector.broadcast %25 : vector<1x4xf32> to vector<64x4xf32>
    %28 = arith.mulf %27, %26 : vector<64x4xf32>
    %cst_14 = arith.constant dense<0.000000e+00> : vector<64xf32>
    %29 = vector.multi_reduction <add>, %28, %cst_14 [1] : vector<64x4xf32> to vector<64xf32>
    %30 = vector.shape_cast %29 : vector<64xf32> to vector<64x1xf32>
    %c0_15 = arith.constant 0 : index
    %c0_16 = arith.constant 0 : index
    %31 = vector.load %arg5[%c0_15, %c0_16] : memref<64x1xf32, #tpu.memory_space<vmem>>, vector<64x1xf32>
    %32 = arith.addf %30, %31 : vector<64x1xf32>
    %33 = arith.negf %32 : vector<64x1xf32>
    %34 = math.exp %33 : vector<64x1xf32>
    %cst_17 = arith.constant 1.000000e+00 : f32
    %35 = vector.broadcast %cst_17 : f32 to vector<64x1xf32>
    %36 = arith.addf %35, %34 : vector<64x1xf32>
    %37 = arith.divf %35, %36 : vector<64x1xf32>
    %38 = vector.broadcast %37 : vector<64x1xf32> to vector<64x256xf32>
    %39 = arith.mulf %1, %38 : vector<64x256xf32>
    %c0_18 = arith.constant 0 : index
    %c0_19 = arith.constant 0 : index
    %c0_20 = arith.constant 0 : index
    %40 = vector.load %arg6[%c0_18, %c0_19, %c0_20] : memref<1x64x256xf32, #tpu.memory_space<vmem>>, vector<1x64x256xf32>
    %41 = vector.shape_cast %40 : vector<1x64x256xf32> to vector<64x256xf32>
    %42 = vector.shape_cast %39 : vector<64x256xf32> to vector<1x64x256xf32>
    tpu.vector_store %arg6[%c0_18, %c0_19, %c0_20], %42 {strides = array<i32>} : memref<1x64x256xf32, #tpu.memory_space<vmem>>, vector<1x64x256xf32>,
    return
  }
  func.func @transform_0(%arg0: i32) -> (i32, i32, i32) {
    %c0_i32 = arith.constant 0 : i32
    %c0_i32_0 = arith.constant 0 : i32
    %c0_i32_1 = arith.constant 0 : i32
    return %arg0, %c0_i32, %c0_i32_0 : i32, i32, i32
  }
  func.func @transform_1(%arg0: i32) -> (i32, i32) {
    %c0_i32 = arith.constant 0 : i32
    %c0_i32_0 = arith.constant 0 : i32
    %c0_i32_1 = arith.constant 0 : i32
    return %c0_i32, %c0_i32_0 : i32, i32
  }
  func.func @transform_2(%arg0: i32) -> (i32, i32) {
    %c0_i32 = arith.constant 0 : i32
    %c0_i32_0 = arith.constant 0 : i32
    %c0_i32_1 = arith.constant 0 : i32
    return %c0_i32, %c0_i32_0 : i32, i32
  }
  func.func @transform_3(%arg0: i32) -> (i32, i32) {
    %c0_i32 = arith.constant 0 : i32
    %c0_i32_0 = arith.constant 0 : i32
    %c0_i32_1 = arith.constant 0 : i32
    return %c0_i32, %c0_i32_0 : i32, i32
  }
  func.func @transform_4(%arg0: i32) -> (i32, i32) {
    %c0_i32 = arith.constant 0 : i32
    %c0_i32_0 = arith.constant 0 : i32
    %c0_i32_1 = arith.constant 0 : i32
    return %c0_i32, %c0_i32_0 : i32, i32
  }
  func.func @transform_5(%arg0: i32) -> (i32, i32, i32) {
    %c0_i32 = arith.constant 0 : i32
    %c0_i32_0 = arith.constant 0 : i32
    %c0_i32_1 = arith.constant 0 : i32
    return %arg0, %c0_i32, %c0_i32_0 : i32, i32, i32
  }
}

</mosaic_0001>

<bundles_post_ra>
// kernel: _lambda_.1
= control target key start
LH: loop header
LB: loop body
LE: loop exit
PB: predicated region body
PF: predicated region fallthrough
CT: control target
= control target key end

     0   :  { %s946_s18 = smov 0   ;;  %s1394_s0 = inlined_call_operand.vmem [shape: f32[2,64,256], index: 0, kind: input, shape index: {}]   ;;  %s1395_s1 = inlined_call_operand.vmem [shape: f32[64,4], index: 1, kind: input, shape index: {}]   ;;  %s1396_s2 = inlined_call_operand.vmem [shape: f32[1,4], index: 2, kind: input, shape index: {}]   ;;  %s1397_s3 = inlined_call_operand.vmem [shape: f32[64,4], index: 3, kind: input, shape index: {}]   ;;  %s1398_s4 = inlined_call_operand.vmem [shape: f32[64,1], index: 4, kind: input, shape index: {}]   ;;  %s1399_s5 = inlined_call_operand.vmem [shape: f32[2,64,256], index: 5, kind: output, shape index: {}]  }
   0x1 LB: > { %s826_s19 = sadd.s32 4294967295, %s913_s18   ;;  %p830_p0 = scmp.ge.s32.totalorder %s913_s18, 1  ;;  %s913_s18 = sphi %s946_s18, %s15_s18  }
   0x2   : > { %p187_p1 = scmp.lt.s32.totalorder %s913_s18, 3 }
   0x4   : > { %p188_p2 = pnand %p830_p0, %p187_p1 }
   0x5   : > { %p215_p3 = scmp.lt.s32.totalorder (!%p188_p2), %s826_s19, 1 }
   0x6   : > { %191 = sbr.rel (%p188_p2) target bundleno = 515 (0x203), region = 40 }
   0xb   : > { %s1407_s19 = smov (!%p215_p3, %s826_s19), 1  ;;  %vm465_vm10 = vcmask 31744  }
   0xc   : > { %s845_s20 = sshll.u32 %s1407_s19, 7 }
   0xd   : > { %s962_s23 = scalar_lea.vmem %s1394_s0, %s845_s20  ;;  %s1357_s7 = scalar_lea.vmem %s1399_s5, %s845_s20 }
   0xe   : > { %v965_v0 = vld [vmem:[%s962_s23 + $0x30] sm:$0xff]  ;;  %v968_v1 = vld [vmem:[%s962_s23 + $0x38] sm:$0xff]  ;;  %v971_v2 = vld [vmem:[%s962_s23 + $0x20] sm:$0xff] }
   0xf   : > { %v250_v3 = vadd.f32 %v968_v1, %v965_v0  ;;  %v976_v4 = vld [vmem:[%s962_s23 + $0x28] sm:$0xff]  ;;  %v979_v5 = vld [vmem:[%s962_s23] sm:$0xff]  ;;  %v989_v9 = vld [vmem:[%s962_s23 + $0x10] sm:$0xff]  ;;  %v279_v18 = vmul.f32 %v965_v0, %v965_v0  ;;  %v280_v19 = vmul.f32 %v968_v1, %v968_v1  ;;  %v277_v20 = vmul.f32 %v971_v2, %v971_v2 }
  0x10   : > { %v982_v6 = vld [vmem:[%s962_s23 + $0x8] sm:$0xff]  ;;  %v247_v7 = vadd.f32 %v976_v4, %v971_v2  ;;  %v992_v10 = vld [vmem:[%s962_s23 + $0x18] sm:$0xff]  ;;  %v275_v11 = vmul.f32 %v989_v9, %v989_v9  ;;  %v273_v13 = vmul.f32 %v979_v5, %v979_v5  ;;  %v278_v21 = vmul.f32 %v976_v4, %v976_v4  ;;  %v1013_v22 = vld [vmem:[%s962_s23 + $0x40] sm:$0xff] }
  0x11   : > { %v241_v8 = vadd.f32 %v982_v6, %v979_v5  ;;  %251 = vadd.xlane.f32.xlu2 %v250_v3  ;;  %v276_v12 = vmul.f32 %v992_v10, %v992_v10  ;;  %v274_v14 = vmul.f32 %v982_v6, %v982_v6  ;;  %v244_v17 = vadd.f32 %v992_v10, %v989_v9  ;;  %v1016_v23 = vld [vmem:[%s962_s23 + $0x48] sm:$0xff]  ;;  %v1021_v27 = vld [vmem:[%s962_s23 + $0x60] sm:$0xff]  ;;  %v1031_v31 = vld [vmem:[%s962_s23 + $0x50] sm:$0xff] }
  0x12   : > { %248 = vadd.xlane.f32.xlu1 %v247_v7  ;;  %v298_v24 = vadd.f32 %v280_v19, %v279_v18  ;;  %v253_v25 = vadd.f32 %v1016_v23, %v1013_v22  ;;  %v295_v26 = vadd.f32 %v278_v21, %v277_v20  ;;  %v1024_v28 = vld [vmem:[%s962_s23 + $0x68] sm:$0xff]  ;;  %v281_v29 = vmul.f32 %v1013_v22, %v1013_v22  ;;  %v1034_v32 = vld [vmem:[%s962_s23 + $0x58] sm:$0xff]  ;;  %v1049_v40 = vld [vmem:[%s962_s23 + $0x70] sm:$0xff] }
  0x13   : > { %242 = vadd.xlane.f32.xlu0 %v241_v8  ;;  %v292_v15 = vadd.f32 %v276_v12, %v275_v11  ;;  %v289_v16 = vadd.f32 %v274_v14, %v273_v13  ;;  %v282_v30 = vmul.f32 %v1016_v23, %v1016_v23  ;;  %v259_v33 = vadd.f32 %v1024_v28, %v1021_v27  ;;  %v1052_v41 = vld [vmem:[%s962_s23 + $0x78] sm:$0xff] }
  0x14   : > { %v256_v35 = vadd.f32 %v1034_v32, %v1031_v31  ;;  %v285_v36 = vmul.f32 %v1021_v27, %v1021_v27  ;;  %v286_v37 = vmul.f32 %v1024_v28, %v1024_v28  ;;  %v283_v38 = vmul.f32 %v1031_v31, %v1031_v31 }
  0x15   : > { %v301_v34 = vadd.f32 %v282_v30, %v281_v29  ;;  %v284_v39 = vmul.f32 %v1034_v32, %v1034_v32  ;;  %v262_v44 = vadd.f32 %v1052_v41, %v1049_v40  ;;  %v287_v45 = vmul.f32 %v1049_v40, %v1049_v40 }
  0x16   : > { %v307_v42 = vadd.f32 %v286_v37, %v285_v36  ;;  %v288_v46 = vmul.f32 %v1052_v41, %v1052_v41 }
  0x17   : > { %v304_v43 = vadd.f32 %v284_v39, %v283_v38 }
  0x18   : > { %v310_v47 = vadd.f32 %v288_v46, %v287_v45 }
  0x19   : > { %293 = vadd.xlane.f32.xlu2 %v292_v15 }
  0x1a   : > { %290 = vadd.xlane.f32.xlu1 %v289_v16 }
  0x1b   : > { %245 = vadd.xlane.f32.xlu0 %v244_v17 }
  0x21   : > { %299 = vadd.xlane.f32.xlu2 %v298_v24 }
  0x22   : > { %254 = vadd.xlane.f32.xlu1 %v253_v25 }
  0x23   : > { %296 = vadd.xlane.f32.xlu0 %v295_v26 }
  0x29   : > { %260 = vadd.xlane.f32.xlu2 %v259_v33 }
  0x2a   : > { %302 = vadd.xlane.f32.xlu1 %v301_v34 }
  0x2b   : > { %257 = vadd.xlane.f32.xlu0 %v256_v35 }
  0x31   : > { %308 = vadd.xlane.f32.xlu2 %v307_v42 }
  0x32   : > { %263 = vadd.xlane.f32.xlu1 %v262_v44 }
  0x33   : > { %305 = vadd.xlane.f32.xlu0 %v304_v43 }
  0x3b   : > { %311 = vadd.xlane.f32.xlu0 %v310_v47 }
  0x84   : > { %v252_v48 = vpop.xlane.xlu2 %251 }
  0x85   : > { %v249_v49 = vpop.xlane.xlu1 %248  ;;  %v1068_v61 = vmul.f32 0.00390625, %v252_v48 }
  0x86   : > { %v243_v50 = vpop.xlane.xlu0 %242  ;;  %v1070_v62 = vmul.f32 0.00390625, %v249_v49 }
  0x87   : > { %v1060_v51 = vmul.f32 0.00390625, %v243_v50  ;;  %v324_v14 = vmul.f32 %v1068_v61, %v1068_v61 }
  0x88   : > { %v323_v15 = vmul.f32 %v1070_v62, %v1070_v62 }
  0x89   : > { %v321_v55 = vmul.f32 %v1060_v51, %v1060_v51 }
  0x8c   : > { %v294_v52 = vpop.xlane.xlu2 %293 }
  0x8d   : > { %v291_v53 = vpop.xlane.xlu1 %290  ;;  %v314_v56 = vmul.f32 0.00390625, %v294_v52 }
  0x8e   : > { %v246_v54 = vpop.xlane.xlu0 %245  ;;  %v313_v57 = vmul.f32 0.00390625, %v291_v53 }
  0x8f   : > { %v1064_v58 = vmul.f32 0.00390625, %v246_v54 }
  0x90   : > { %v329_v59 = vsub.f32 %v313_v57, %v321_v55 }
  0x91   : > { %v322_v60 = vmul.f32 %v1064_v58, %v1064_v58 }
  0x92   : > { %v1072_v63 = vmax.f32 %v329_v59, 0.0 }
  0x93   : > { %v330_v3 = vsub.f32 %v314_v56, %v322_v60 }
  0x94   : > { %859 = vrsqrt.f32 %v1072_v63  ;;  %v300_v7 = vpop.xlane.xlu2 %299  ;;  %vm352_vm0 = vcmp.eq.f32.partialorder %v1072_v63, inf  ;;  %vm354_vm2 = vcmp.eq.f32.partialorder %v1072_v63, 0.0 }
  0x95   : > { %v1075_v8 = vmax.f32 %v330_v3, 0.0  ;;  %v316_v11 = vmul.f32 0.00390625, %v300_v7  ;;  %v255_v12 = vpop.xlane.xlu1 %254 }
  0x96   : > { %v297_v13 = vpop.xlane.xlu0 %296  ;;  %v1082_v18 = vmul.f32 0.00390625, %v255_v12 }
  0x97   : > { %v315_v16 = vmul.f32 0.00390625, %v297_v13  ;;  %861 = vrsqrt.f32 %v1075_v8  ;;  %v332_v17 = vsub.f32 %v316_v11, %v324_v14  ;;  %vm364_vm1 = vcmp.eq.f32.partialorder %v1075_v8, inf }
  0x98   : > { %v325_v26 = vmul.f32 %v1082_v18, %v1082_v18  ;;  %vm366_vm3 = vcmp.eq.f32.partialorder %v1075_v8, 0.0 }
  0x99   : > { %v331_v19 = vsub.f32 %v315_v16, %v323_v15  ;;  %v1084_v21 = vmax.f32 %v332_v17, 0.0 }
  0x9a   : > { %v860_v20 = vpop.eup %859 }
  0x9b   : > { %v1086_v24 = vmax.f32 %v331_v19, 0.0  ;;  %v346_v25 = vmul.f32 %v860_v20, %v1072_v63  ;;  %863 = vrsqrt.f32 %v1084_v21  ;;  %vm388_vm6 = vcmp.eq.f32.partialorder %v1084_v21, inf }
  0x9c   : > { %v261_v29 = vpop.xlane.xlu2 %260  ;;  %vm390_vm8 = vcmp.eq.f32.partialorder %v1084_v21, 0.0 }
  0x9d   : > { %v862_v30 = vpop.eup %861  ;;  %865 = vrsqrt.f32 %v1086_v24  ;;  %v303_v33 = vpop.xlane.xlu1 %302  ;;  %v347_v35 = vmul.f32 %v860_v20, %v346_v25  ;;  %v1094_v39 = vmul.f32 0.00390625, %v261_v29  ;;  %vm376_vm4 = vcmp.eq.f32.partialorder %v1086_v24, inf }
  0x9e   : > { %v258_v34 = vpop.xlane.xlu0 %257  ;;  %v358_v36 = vmul.f32 %v862_v30, %v1075_v8  ;;  %v317_v37 = vmul.f32 0.00390625, %v303_v33  ;;  %vm378_vm5 = vcmp.eq.f32.partialorder %v1086_v24, 0.0 }
  0x9f   : > { %v348_v44 = vmul.f32 0.5, %v347_v35  ;;  %v327_v50 = vmul.f32 %v1094_v39, %v1094_v39  ;;  %v1103_v52 = vmul.f32 0.00390625, %v258_v34 }
  0xa0   : > { %v359_v38 = vmul.f32 %v862_v30, %v358_v36  ;;  %v333_v42 = vsub.f32 %v317_v37, %v325_v26 }
  0xa1   : > { %v864_v43 = vpop.eup %863  ;;  %v349_v57 = vsub.f32 1.5, %v348_v44  ;;  %v326_v12 = vmul.f32 %v1103_v52, %v1103_v52 }
  0xa2   : > { %v360_v45 = vmul.f32 0.5, %v359_v38  ;;  %v1096_v46 = vmax.f32 %v333_v42, 0.0  ;;  %v382_v48 = vmul.f32 %v864_v43, %v1084_v21 }
  0xa3   : > { %v866_v47 = vpop.eup %865  ;;  %v350_v17 = vmul.f32 %v860_v20, %v349_v57 }
  0xa4   : > { %v370_v49 = vmul.f32 %v866_v47, %v1086_v24  ;;  %867 = vrsqrt.f32 %v1096_v46  ;;  %v309_v53 = vpop.xlane.xlu2 %308  ;;  %v361_v54 = vsub.f32 1.5, %v360_v45  ;;  %v383_v55 = vmul.f32 %v864_v43, %v382_v48 }
  0xa5   : > { %v319_v60 = vmul.f32 0.00390625, %v309_v53  ;;  %v264_v14 = vpop.xlane.xlu1 %263  ;;  %vm400_vm7 = vcmp.eq.f32.partialorder %v1096_v46, inf  ;;  %vm402_vm9 = vcmp.eq.f32.partialorder %v1096_v46, 0.0 }
  0xa6   : > { %v306_v56 = vpop.xlane.xlu0 %305  ;;  %v371_v59 = vmul.f32 %v866_v47, %v370_v49  ;;  %v384_v7 = vmul.f32 0.5, %v383_v55  ;;  %v362_v15 = vmul.f32 %v862_v30, %v361_v54  ;;  %v1110_v33 = vmul.f32 0.00390625, %v264_v14 }
  0xa7   : > { %v318_v3 = vmul.f32 0.00390625, %v306_v56  ;;  %v335_v13 = vsub.f32 %v319_v60, %v327_v50  ;;  %v351_v30 = vmul.f32 %v350_v17, %v1072_v63  ;;  %v355_v49 = vand.u32 2147483648, %v1072_v63 }
  0xa8   : > { %v372_v11 = vmul.f32 0.5, %v371_v59  ;;  %v385_v34 = vsub.f32 1.5, %v384_v7  ;;  %v363_v36 = vmul.f32 %v362_v15, %v1075_v8  ;;  %v328_v45 = vmul.f32 %v1110_v33, %v1110_v33 }
  0xa9   : > { %v1107_v25 = vmax.f32 %v335_v13, 0.0  ;;  %v334_v26 = vsub.f32 %v318_v3, %v326_v12  ;;  %v353_v55 = vsel %vm352_vm0, %v1072_v63, %v351_v30  ;;  %v367_v56 = vand.u32 2147483648, %v1075_v8  ;;  %v450_v63 = vld [vmem:[%s1395_s1 + $0x8] sm:$0xff] }
  0xaa   : > { %v868_v16 = vpop.eup %867  ;;  %v373_v19 = vsub.f32 1.5, %v372_v11  ;;  %v365_v50 = vsel %vm364_vm1, %v1075_v8, %v363_v36  ;;  %v379_v11 = vand.u32 2147483648, %v1086_v24  ;;  %v356_v12 = vsel %vm354_vm2, %v355_v49, %v353_v55 }
  0xab   : > { %v394_v29 = vmul.f32 %v868_v16, %v1096_v46  ;;  %869 = vrsqrt.f32 %v1107_v25  ;;  %v1115_v42 = vmax.f32 %v334_v26, 0.0  ;;  %v368_v3 = vsel %vm366_vm3, %v367_v56, %v365_v50 }
  0xac   : > { %v374_v35 = vmul.f32 %v866_v47, %v373_v19  ;;  %v386_v47 = vmul.f32 %v864_v43, %v385_v34  ;;  %v442_v17 = vadd.f32 %v368_v3, %v1064_v58  ;;  %v391_v19 = vand.u32 2147483648, %v1084_v21  ;;  %v449_v58 = vld [vmem:[%s1395_s1] sm:$0xff] }
  0xad   : > { %v395_v37 = vmul.f32 %v868_v16, %v394_v29  ;;  %871 = vrsqrt.f32 %v1115_v42  ;;  %v403_v30 = vand.u32 2147483648, %v1096_v46  ;;  %vm424_vm11 = vcmp.eq.f32.partialorder %v1107_v25, inf }
  0xae   : > { %v312_v38 = vpop.xlane.xlu0 %311  ;;  %v375_v20 = vmul.f32 %v374_v35, %v1086_v24  ;;  %v387_v7 = vmul.f32 %v386_v47, %v1084_v21  ;;  %vm426_vm12 = vcmp.eq.f32.partialorder %v1107_v25, 0.0  ;;  %vm412_vm13 = vcmp.eq.f32.partialorder %v1115_v42, inf }
  0xaf   : > { %v396_v44 = vmul.f32 0.5, %v395_v37  ;;  %v320_v48 = vmul.f32 0.00390625, %v312_v38  ;;  %v451_v38 = vld [vmem:[%s1395_s1 + $0x10] sm:$0xff]  ;;  %vm414_vm14 = vcmp.eq.f32.partialorder %v1115_v42, 0.0 }
  0xb0   : > { %v377_v43 = vsel %vm376_vm4, %v1086_v24, %v375_v20  ;;  %v441_v24 = vadd.f32 %v356_v12, %v1060_v51  ;;  %v389_v34 = vsel %vm388_vm6, %v1084_v21, %v387_v7  ;;  %v458_v20 = vmul.f32 %v450_v63, %v442_v17 }
  0xb1   : > { %v397_v53 = vsub.f32 1.5, %v396_v44  ;;  %v870_v54 = vpop.eup %869  ;;  %v336_v60 = vsub.f32 %v320_v48, %v328_v45  ;;  %v392_v44 = vsel %vm390_vm8, %v391_v19, %v389_v34 }
  0xb2   : > { %v418_v59 = vmul.f32 %v870_v54, %v1107_v25  ;;  %v457_v47 = vmul.f32 %v449_v58, %v441_v24  ;;  %v444_v55 = vadd.f32 %v392_v44, %v1068_v61  ;;  %v467_v56 = vsel %vm465_vm10, %v458_v20, 0.0 }
  0xb3   : > { %v398_v57 = vmul.f32 %v868_v16, %v397_v53  ;;  %v1138_v14 = vmax.f32 %v336_v60, 0.0  ;;  %v872_v15 = vpop.eup %871  ;;  %v380_v16 = vsel %vm378_vm5, %v379_v11, %v377_v43  ;;  %v453_v60 = vld [vmem:[%s1395_s1 + $0x20] sm:$0xff]  ;;  %v427_v61 = vand.u32 2147483648, %v1107_v25 }
  0xb4   : > { %v419_v13 = vmul.f32 %v870_v54, %v418_v59  ;;  %v406_v29 = vmul.f32 %v872_v15, %v1115_v42  ;;  %v443_v35 = vadd.f32 %v380_v16, %v1070_v62  ;;  %v466_v59 = vsel %vm465_vm10, %v457_v47, 0.0 }
  0xb5   : > { %v399_v8 = vmul.f32 %v398_v57, %v1096_v46  ;;  %873 = vrsqrt.f32 %v1138_v14  ;;  %v468_v12 = vadd.f32 %v467_v56, %v466_v59  ;;  %vm436_vm15 = vcmp.eq.f32.partialorder %v1138_v14, inf }
  0xb6   : > { %v420_v26 = vmul.f32 0.5, %v419_v13  ;;  %v407_v51 = vmul.f32 %v872_v15, %v406_v29  ;;  %v459_v49 = vmul.f32 %v451_v38, %v443_v35  ;;  %v415_v13 = vand.u32 2147483648, %v1115_v42 }
  0xb7   : > { %v401_v36 = vsel %vm400_vm7, %v1096_v46, %v399_v8  ;;  %v452_v46 = vld [vmem:[%s1395_s1 + $0x18] sm:$0xff]  ;;  %vm438_vm0 = vcmp.eq.f32.partialorder %v1138_v14, 0.0 }
  0xb8   : > { %v421_v37 = vsub.f32 1.5, %v420_v26  ;;  %v408_v48 = vmul.f32 0.5, %v407_v51  ;;  %v404_v62 = vsel %vm402_vm9, %v403_v30, %v401_v36  ;;  %v469_v3 = vsel %vm465_vm10, %v459_v49, 0.0  ;;  %v455_v51 = vld [vmem:[%s1395_s1 + $0x30] sm:$0xff] }
  0xb9   : > { %v445_v43 = vadd.f32 %v404_v62, %v1082_v18  ;;  %v460_v8 = vmul.f32 %v452_v46, %v444_v55  ;;  %v470_v19 = vadd.f32 %v469_v3, %v468_v12  ;;  %v491_v3 = vld [vmem:[%s1397_s3 + $0x8] sm:$0xff] }
  0xba   : > { %v422_v45 = vmul.f32 %v870_v54, %v421_v37  ;;  %v409_v53 = vsub.f32 1.5, %v408_v48  ;;  %v456_v48 = vld [vmem:[%s1395_s1 + $0x38] sm:$0xff] }
  0xbb   : > { %v874_v21 = vpop.eup %873  ;;  %v471_v34 = vsel %vm465_vm10, %v460_v8, 0.0 }
  0xbc   : > { %v423_v50 = vmul.f32 %v422_v45, %v1107_v25  ;;  %v410_v54 = vmul.f32 %v872_v15, %v409_v53  ;;  %v430_v57 = vmul.f32 %v874_v21, %v1138_v14  ;;  %v461_v15 = vmul.f32 %v453_v60, %v445_v43 }
  0xbe   : > { %v425_v7 = vsel %vm424_vm11, %v1107_v25, %v423_v50  ;;  %v411_v18 = vmul.f32 %v410_v54, %v1115_v42  ;;  %v431_v11 = vmul.f32 %v874_v21, %v430_v57  ;;  %v454_v25 = vld [vmem:[%s1395_s1 + $0x28] sm:$0xff]  ;;  %v473_v58 = vsel %vm465_vm10, %v461_v15, 0.0  ;;  %v487_v57 = vld [vmem:[%s1396_s2] sm:$0x1] }
  0xbf   : > { %v428_v26 = vsel %vm426_vm12, %v427_v61, %v425_v7  ;;  %v490_v7 = vld [vmem:[%s1397_s3] sm:$0xff] }
  0xc0   : > { %v413_v16 = vsel %vm412_vm13, %v1115_v42, %v411_v18  ;;  %v432_v17 = vmul.f32 0.5, %v431_v11  ;;  %v447_v35 = vadd.f32 %v428_v26, %v1094_v39  ;;  %v472_v42 = vadd.f32 %v471_v34, %v470_v19  ;;  %v494_v19 = vld [vmem:[%s1397_s3 + $0x20] sm:$0xff]  ;;  %v493_v26 = vld [vmem:[%s1397_s3 + $0x18] sm:$0xff] }
  0xc1   : > { %v416_v29 = vsel %vm414_vm14, %v415_v13, %v413_v16 }
  0xc2   : > { %v446_v24 = vadd.f32 %v416_v29, %v1103_v52  ;;  %v433_v63 = vsub.f32 1.5, %v432_v17  ;;  %v474_v20 = vadd.f32 %v473_v58, %v472_v42  ;;  %v439_v52 = vand.u32 2147483648, %v1138_v14  ;;  %v495_v17 = vld [vmem:[%s1397_s3 + $0x28] sm:$0xff] }
  0xc3   : > { %v463_v44 = vmul.f32 %v455_v51, %v447_v35  ;;  %v497_v35 = vld [vmem:[%s1397_s3 + $0x38] sm:$0xff] }
  0xc4   : > { %v462_v36 = vmul.f32 %v454_v25, %v446_v24  ;;  %v434_v37 = vmul.f32 %v874_v21, %v433_v63 }
  0xc5   : > { %v477_v49 = vsel %vm465_vm10, %v463_v44, 0.0 }
  0xc6   : > { %v475_v38 = vsel %vm465_vm10, %v462_v36, 0.0  ;;  %v435_v30 = vmul.f32 %v434_v37, %v1138_v14  ;;  %v496_v36 = vld [vmem:[%s1397_s3 + $0x30] sm:$0xff] }
  0xc7   : > { %v476_v39 = vadd.f32 %v475_v38, %v474_v20  ;;  %v532_v20 = vld [vmem:[%s1398_s4 + $0x8] sm:$0xff] }
  0xc8   : > { %v437_v45 = vsel %vm436_vm15, %v1138_v14, %v435_v30  ;;  %v533_v30 = vld [vmem:[%s1398_s4 + $0x10] sm:$0xff] }
  0xc9   : > { %v440_v47 = vsel %vm438_vm0, %v439_v52, %v437_v45  ;;  %v478_v53 = vadd.f32 %v477_v49, %v476_v39  ;;  %v531_v52 = vld [vmem:[%s1398_s4] sm:$0xff] }
  0xca   : > { %v448_v62 = vadd.f32 %v440_v47, %v1110_v33  ;;  %v492_v33 = vld [vmem:[%s1397_s3 + $0x10] sm:$0xff] }
  0xcc   : > { %v464_v50 = vmul.f32 %v456_v48, %v448_v62  ;;  %v915_v62 = vmov 0  }
  0xcd   : > { %858 = vset.pattern.permute.xlu2 %v915_v62  ;;  %857 = vset.pattern.permute.xlu1 %v915_v62 }
  0xce   : > { %v479_v21 = vsel %vm465_vm10, %v464_v50, 0.0  ;;  %856 = vset.pattern.permute.xlu0 %v915_v62 }
  0xcf   : > { %v480_v55 = vadd.f32 %v479_v21, %v478_v53 }
  0xd1   : > { %v481_v56 = vrot.slane %v480_v55, 4 }
  0xd3   : > { %v482_v46 = vadd.f32 %v481_v56, %v480_v55  ;;  %v536_v55 = vld [vmem:[%s1398_s4 + $0x28] sm:$0xff]  ;;  %v535_v56 = vld [vmem:[%s1398_s4 + $0x20] sm:$0xff] }
  0xd5   : > { %v483_v43 = vrot.slane %v482_v46, 2 }
  0xd7   : > { %v484_v54 = vadd.f32 %v483_v43, %v482_v46  ;;  %v534_v46 = vld [vmem:[%s1398_s4 + $0x18] sm:$0xff] }
  0xd9   : > { %v485_v14 = vrot.slane %v484_v54, 1 }
  0xdb   : > { %v486_v59 = vadd.f32 %v485_v14, %v484_v54 }
  0xdd   : > { %v488_v60 = vadd.f32 %v487_v57, %v486_v59 }
  0xdf   : > { %v489_v61 = vmax.f32 %v488_v60, 0.0 }
  0xe1   : > { %v498_v18 = vperm.slane %v489_v61, 0 }
  0xe3   : > { %v501_v11 = vmul.f32 %v498_v18, %v492_v33  ;;  %v500_v12 = vmul.f32 %v498_v18, %v491_v3  ;;  %v499_v8 = vmul.f32 %v498_v18, %v490_v7  ;;  %v504_v25 = vmul.f32 %v498_v18, %v495_v17 }
  0xe4   : > { %v503_v29 = vmul.f32 %v498_v18, %v494_v19  ;;  %v502_v24 = vmul.f32 %v498_v18, %v493_v26  ;;  %v506_v37 = vmul.f32 %v498_v18, %v497_v35  ;;  %v505_v42 = vmul.f32 %v498_v18, %v496_v36 }
  0xe5   : > { %v513_v13 = vsel %vm465_vm10, %v501_v11, 0.0  ;;  %v510_v15 = vsel %vm465_vm10, %v500_v12, 0.0  ;;  %v507_v16 = vsel %vm465_vm10, %v499_v8, 0.0  ;;  %v522_v63 = vsel %vm465_vm10, %v504_v25, 0.0 }
  0xe6   : > { %514 = vadd.xlane.f32.xlu0 %v513_v13  ;;  %511 = vadd.xlane.f32.xlu2 %v510_v15  ;;  %v519_v34 = vsel %vm465_vm10, %v503_v29, 0.0  ;;  %v516_v58 = vsel %vm465_vm10, %v502_v24, 0.0  ;;  %v528_v51 = vsel %vm465_vm10, %v506_v37, 0.0  ;;  %v525_v38 = vsel %vm465_vm10, %v505_v42, 0.0  ;;  %v538_v15 = vld [vmem:[%s1398_s4 + $0x38] sm:$0xff] }
  0xe7   : > { %508 = vadd.xlane.f32.xlu1 %v507_v16  ;;  %v537_v16 = vld [vmem:[%s1398_s4 + $0x30] sm:$0xff] }
  0xee   : > { %523 = vadd.xlane.f32.xlu0 %v522_v63  ;;  %520 = vadd.xlane.f32.xlu2 %v519_v34 }
  0xef   : > { %517 = vadd.xlane.f32.xlu1 %v516_v58 }
  0xf6   : > { %529 = vadd.xlane.f32.xlu2 %v528_v51 }
  0xf7   : > { %526 = vadd.xlane.f32.xlu1 %v525_v38 }
 0x159   : > { %v515_v44 = vpop.xlane.xlu0 %514  ;;  %v512_v45 = vpop.xlane.xlu2 %511 }
 0x15a   : > { %v541_v39 = vadd.f32 %v533_v30, %v515_v44  ;;  %v540_v48 = vadd.f32 %v532_v20, %v512_v45  ;;  %v509_v47 = vpop.xlane.xlu1 %508 }
 0x15b   : > { %v539_v49 = vadd.f32 %v531_v52, %v509_v47 }
 0x15c   : > { %v837_v50 = vmul.f32 -1.442695, %v541_v39  ;;  %v836_v53 = vmul.f32 -1.442695, %v540_v48 }
 0x15d   : > { %v835_v21 = vmul.f32 -1.442695, %v539_v49 }
 0x15e   : > { %875 = vpow2.f32 %v837_v50 }
 0x15f   : > { %877 = vpow2.f32 %v836_v53 }
 0x160   : > { %879 = vpow2.f32 %v835_v21 }
 0x161   : > { %v524_v43 = vpop.xlane.xlu0 %523  ;;  %v521_v54 = vpop.xlane.xlu2 %520 }
 0x162   : > { %v544_v14 = vadd.f32 %v536_v55, %v524_v43  ;;  %v543_v57 = vadd.f32 %v535_v56, %v521_v54  ;;  %v518_v59 = vpop.xlane.xlu1 %517 }
 0x163   : > { %v542_v60 = vadd.f32 %v534_v46, %v518_v59 }
 0x164   : > { %v876_v61 = vpop.eup %875  ;;  %v840_v33 = vmul.f32 -1.442695, %v544_v14  ;;  %v839_v12 = vmul.f32 -1.442695, %v543_v57 }
 0x165   : > { %v878_v3 = vpop.eup %877  ;;  %v573_v7 = vadd.f32 1.0, %v876_v61  ;;  %v838_v13 = vmul.f32 -1.442695, %v542_v60 }
 0x166   : > { %v880_v18 = vpop.eup %879  ;;  %v1259_v11 = vadd.f32 1.0, %v878_v3  ;;  %881 = vpow2.f32 %v840_v33 }
 0x167   : > { %883 = vrcp.f32 %v573_v7  ;;  %v1261_v8 = vadd.f32 1.0, %v880_v18  ;;  %v618_v29 = vand.u32 2147483647, %v573_v7  ;;  %vm614_vm1 = vweird.f32 %v573_v7 }
 0x168   : > { %885 = vrcp.f32 %v1259_v11  ;;  %v620_v35 = vand.u32 2147483648, %v573_v7  ;;  %vm599_vm2 = vweird.f32 %v1259_v11  ;;  %v603_v20 = vand.u32 2147483647, %v1259_v11 }
 0x169   : > { %887 = vrcp.f32 %v1261_v8  ;;  %v530_v17 = vpop.xlane.xlu2 %529  ;;  %vm1274_vm3 = vcmp.eq.f32.partialorder %v618_v29, 8.507059e+37  ;;  %v605_v52 = vand.u32 2147483648, %v1259_v11  ;;  %vm584_vm4 = vweird.f32 %v1261_v8 }
 0x16a   : > { %889 = vpow2.f32 %v839_v12  ;;  %v546_v19 = vadd.f32 %v538_v15, %v530_v17  ;;  %v527_v26 = vpop.xlane.xlu1 %526  ;;  %v590_v49 = vand.u32 2147483648, %v1261_v8  ;;  %v588_v56 = vand.u32 2147483647, %v1261_v8 }
 0x16b   : > { %891 = vpow2.f32 %v838_v13  ;;  %v545_v25 = vadd.f32 %v537_v16, %v527_v26  ;;  %v621_v57 = vor.u32 1.1754944e-38, %v620_v35  ;;  %vm604_vm9 = vcmp.eq.f32.partialorder %v603_v20, 8.507059e+37 }
 0x16c   : > { %v882_v24 = vpop.eup %881  ;;  %v842_v63 = vmul.f32 -1.442695, %v546_v19  ;;  %v606_v33 = vor.u32 1.1754944e-38, %v605_v52  ;;  %v591_v18 = vor.u32 1.1754944e-38, %v590_v49  ;;  %vm589_vm12 = vcmp.eq.f32.partialorder %v588_v56, 8.507059e+37 }
 0x16d   : > { %v884_v34 = vpop.eup %883  ;;  %v841_v58 = vmul.f32 -1.442695, %v545_v25  ;;  %v1271_v37 = vadd.f32 1.0, %v882_v24 }
 0x16e   : > { %v886_v36 = vpop.eup %885  ;;  %893 = vpow2.f32 %v842_v63  ;;  %v610_v42 = vmul.f32 %v884_v34, %v573_v7  ;;  %vm615_vm5 = vweird.f32 %v884_v34 }
 0x16f   : > { %v888_v51 = vpop.eup %887  ;;  %v595_v30 = vmul.f32 %v886_v36, %v1259_v11  ;;  %895 = vpow2.f32 %v841_v58  ;;  %vm600_vm6 = vweird.f32 %v886_v36  ;;  %vm616_vm8 = vmor %vm614_vm1, %vm615_vm5 }
 0x170   : > { %v890_v44 = vpop.eup %889  ;;  %v611_v45 = vsub.f32 1.0, %v610_v42  ;;  %v580_v39 = vmul.f32 %v888_v51, %v1261_v8  ;;  %897 = vrcp.f32 %v1271_v37  ;;  %vm585_vm7 = vweird.f32 %v888_v51  ;;  %vm601_vm10 = vmor %vm599_vm2, %vm600_vm6 }
 0x171   : > { %v892_v48 = vpop.eup %891  ;;  %v1283_v47 = vadd.f32 1.0, %v890_v44  ;;  %v596_v62 = vsub.f32 1.0, %v595_v30  ;;  %vm586_vm11 = vmor %vm584_vm4, %vm585_vm7 }
 0x172   : > { %v1287_v50 = vadd.f32 1.0, %v892_v48  ;;  %v612_v53 = vmul.f32 %v884_v34, %v611_v45  ;;  %v581_v21 = vsub.f32 1.0, %v580_v39 }
 0x173   : > { %899 = vrcp.f32 %v1283_v47  ;;  %v597_v55 = vmul.f32 %v886_v36, %v596_v62  ;;  %v648_v17 = vand.u32 2147483647, %v1283_v47  ;;  %v650_v8 = vand.u32 2147483648, %v1283_v47 }
 0x174   : > { %v894_v46 = vpop.eup %893  ;;  %901 = vrcp.f32 %v1287_v50  ;;  %v613_v43 = vadd.f32 %v884_v34, %v612_v53  ;;  %v582_v54 = vmul.f32 %v888_v51, %v581_v21  ;;  %v633_v63 = vand.u32 2147483647, %v1287_v50 }
 0x175   : > { %v1292_v14 = vadd.f32 1.0, %v894_v46  ;;  %v598_v59 = vadd.f32 %v886_v36, %v597_v55  ;;  %v896_v60 = vpop.eup %895  ;;  %vm644_vm13 = vweird.f32 %v1283_v47  ;;  %vm1317_vm14 = vcmp.eq.f32.partialorder %v648_v17, 8.507059e+37 }
 0x176   : > { %v617_v61 = vsel %vm616_vm8, %v884_v34, %v613_v43  ;;  %v583_v3 = vadd.f32 %v888_v51, %v582_v54  ;;  %v1299_v12 = vadd.f32 1.0, %v896_v60  ;;  %v1306_v15 = vpop.eup %897  ;;  %vm629_vm15 = vweird.f32 %v1287_v50 }
 0x177   : > { %903 = vrcp.f32 %v1292_v14  ;;  %v622_v13 = vsel %vm1274_vm3, %v621_v57, %v617_v61  ;;  %v602_v7 = vsel %vm601_vm10, %v886_v36, %v598_v59  ;;  %v655_v34 = vmul.f32 %v1306_v15, %v1271_v37 }
 0x178   : > { %711 = vperm.xlu2 %858, %v622_v13   ;;  %v607_v11 = vsel %vm604_vm9, %v606_v33, %v602_v7  ;;  %v587_v16 = vsel %vm586_vm11, %v888_v51, %v583_v3  ;;  %905 = vrcp.f32 %v1299_v12  ;;  %v635_v51 = vand.u32 2147483648, %v1287_v50 }
 0x179   : > { %v900_v19 = vpop.eup %899  ;;  %706 = vperm.xlu1 %857, %v607_v11   ;;  %v592_v26 = vsel %vm589_vm12, %v591_v18, %v587_v16  ;;  %v656_v38 = vsub.f32 1.0, %v655_v34  ;;  %v651_v20 = vor.u32 1.1754944e-38, %v650_v8  ;;  %vm1324_vm2 = vcmp.eq.f32.partialorder %v633_v63, 8.507059e+37 }
 0x17a   : > { %v902_v25 = vpop.eup %901  ;;  %701 = vperm.xlu0 %856, %v592_v26   ;;  %v640_v29 = vmul.f32 %v900_v19, %v1283_v47  ;;  %vm645_vm0 = vweird.f32 %v900_v19  ;;  %vm689_vm3 = vweird.f32 %v1292_v14  ;;  %v693_v49 = vand.u32 2147483647, %v1292_v14 }
 0x17b   : > { %v625_v24 = vmul.f32 %v902_v25, %v1287_v50  ;;  %vm630_vm1 = vweird.f32 %v902_v25  ;;  %vm646_vm4 = vmor %vm644_vm13, %vm645_vm0  ;;  %v636_v55 = vor.u32 1.1754944e-38, %v635_v51  ;;  %v695_v56 = vand.u32 2147483648, %v1292_v14 }
 0x17c   : > { %v641_v58 = vsub.f32 1.0, %v640_v29  ;;  %v657_v46 = vmul.f32 %v1306_v15, %v656_v38  ;;  %vm631_vm5 = vmor %vm629_vm15, %vm630_vm1  ;;  %v678_v47 = vand.u32 2147483647, %v1299_v12  ;;  %v680_v61 = vand.u32 2147483648, %v1299_v12 }
 0x17d   : > { %v904_v36 = vpop.eup %903  ;;  %v626_v42 = vsub.f32 1.0, %v625_v24  ;;  %v696_v50 = vor.u32 1.1754944e-38, %v695_v56  ;;  %vm660_vm9 = vweird.f32 %v1306_v15  ;;  %v665_v7 = vand.u32 2147483648, %v1271_v37 }
 0x17e   : > { %v642_v30 = vmul.f32 %v900_v19, %v641_v58  ;;  %v685_v52 = vmul.f32 %v904_v36, %v1292_v14  ;;  %v906_v44 = vpop.eup %905  ;;  %vm690_vm6 = vweird.f32 %v904_v36  ;;  %v658_v13 = vadd.f32 %v1306_v15, %v657_v46 }
 0x17f   : > { %v627_v45 = vmul.f32 %v902_v25, %v626_v42  ;;  %v670_v53 = vmul.f32 %v906_v44, %v1299_v12  ;;  %vm675_vm7 = vweird.f32 %v906_v44  ;;  %vm691_vm8 = vmor %vm689_vm3, %vm690_vm6  ;;  %vm694_vm10 = vcmp.eq.f32.partialorder %v693_v49, 8.507059e+37 }
 0x180   : > { %v643_v48 = vadd.f32 %v900_v19, %v642_v30  ;;  %v686_v62 = vsub.f32 1.0, %v685_v52  ;;  %vm674_vm11 = vweird.f32 %v1299_v12  ;;  %vm659_vm12 = vweird.f32 %v1271_v37 }
 0x181   : > { %v628_v21 = vadd.f32 %v902_v25, %v627_v45  ;;  %v671_v57 = vsub.f32 1.0, %v670_v53  ;;  %vm676_vm13 = vmor %vm674_vm11, %vm675_vm7  ;;  %v681_v14 = vor.u32 1.1754944e-38, %v680_v61  ;;  %vm679_vm15 = vcmp.eq.f32.partialorder %v678_v47, 8.507059e+37 }
 0x182   : > { %v647_v43 = vsel %vm646_vm4, %v900_v19, %v643_v48  ;;  %v687_v54 = vmul.f32 %v904_v36, %v686_v62  ;;  %v663_v19 = vand.u32 2147483647, %v1271_v37  ;;  %v666_v8 = vor.u32 1.1754944e-38, %v665_v7 }
 0x183   : > { %v652_v59 = vsel %vm1317_vm14, %v651_v20, %v647_v43  ;;  %v632_v60 = vsel %vm631_vm5, %v902_v25, %v628_v21  ;;  %v672_v18 = vmul.f32 %v906_v44, %v671_v57  ;;  %vm661_vm14 = vmor %vm659_vm12, %vm660_vm9 }
 0x184   : > { %721 = vperm.xlu1 %857, %v652_v59   ;;  %v637_v33 = vsel %vm1324_vm2, %v636_v55, %v632_v60  ;;  %v688_v3 = vadd.f32 %v904_v36, %v687_v54  ;;  %v662_v25 = vsel %vm661_vm14, %v1306_v15, %v658_v13  ;;  %vm664_vm0 = vcmp.eq.f32.partialorder %v663_v19, 8.507059e+37 }
 0x185   : > { %716 = vperm.xlu2 %858, %v637_v33   ;;  %v673_v16 = vadd.f32 %v906_v44, %v672_v18  ;;  %v667_v24 = vsel %vm664_vm0, %v666_v8, %v662_v25 }
 0x186   : > { %v692_v11 = vsel %vm691_vm8, %v904_v36, %v688_v3 }
 0x187   : > { %v697_v17 = vsel %vm694_vm10, %v696_v50, %v692_v11  ;;  %v677_v26 = vsel %vm676_vm13, %v906_v44, %v673_v16 }
 0x188   : > { %736 = vperm.xlu0 %856, %v697_v17   ;;  %v682_v29 = vsel %vm679_vm15, %v681_v14, %v677_v26 }
 0x18c   : > { %731 = vperm.xlu1 %857, %v682_v29  }
 0x18d   : > { %726 = vperm.xlu2 %858, %v667_v24  }
 0x1d2   : > { %v712_v37 = vpop.permute.xlu2 %711 }
 0x1d3   : > { %v743_v12 = vmul.f32 %v712_v37, %v971_v2  ;;  %v744_v15 = vmul.f32 %v712_v37, %v976_v4 }
 0x1d5   : > { %759 = vst [vmem:[%s1357_s7 + $0x20] sm:$0xff] %v743_v12 }
 0x1d6   : > { %760 = vst [vmem:[%s1357_s7 + $0x28] sm:$0xff] %v744_v15 }
 0x1df   : > { %v717_v63 = vpop.permute.xlu2 %716 }
 0x1e0   : > { %v745_v34 = vmul.f32 %v717_v63, %v965_v0  ;;  %v746_v58 = vmul.f32 %v717_v63, %v968_v1 }
 0x1e2   : > { %761 = vst [vmem:[%s1357_s7 + $0x30] sm:$0xff] %v745_v34 }
 0x1e3   : > { %762 = vst [vmem:[%s1357_s7 + $0x38] sm:$0xff] %v746_v58 }
 0x1e7   : > { %v727_v35 = vpop.permute.xlu2 %726 }
 0x1e8   : > { %v749_v36 = vmul.f32 %v727_v35, %v1031_v31  ;;  %v750_v2 = vmul.f32 %v727_v35, %v1034_v32 }
 0x1ea   : > { %765 = vst [vmem:[%s1357_s7 + $0x50] sm:$0xff] %v749_v36 }
 0x1eb   : > { %766 = vst [vmem:[%s1357_s7 + $0x58] sm:$0xff] %v750_v2  ;;  %v707_v4 = vpop.permute.xlu1 %706 }
 0x1ec   : > { %v702_v42 = vpop.permute.xlu0 %701  ;;  %v741_v0 = vmul.f32 %v707_v4, %v989_v9  ;;  %v742_v38 = vmul.f32 %v707_v4, %v992_v10 }
 0x1ed   : > { %v739_v1 = vmul.f32 %v702_v42, %v979_v5  ;;  %v740_v51 = vmul.f32 %v702_v42, %v982_v6 }
 0x1ee   : > { %757 = vst [vmem:[%s1357_s7 + $0x10] sm:$0xff] %v741_v0 }
 0x1ef   : > { %755 = vst [vmem:[%s1357_s7] sm:$0xff] %v739_v1 }
 0x1f0   : > { %756 = vst [vmem:[%s1357_s7 + $0x8] sm:$0xff] %v740_v51 }
 0x1f1   : > { %758 = vst [vmem:[%s1357_s7 + $0x18] sm:$0xff] %v742_v38 }
 0x1f6   : > { %v722_v31 = vpop.permute.xlu1 %721 }
 0x1f7   : > { %v747_v32 = vmul.f32 %v722_v31, %v1013_v22  ;;  %v748_v30 = vmul.f32 %v722_v31, %v1016_v23 }
 0x1f9   : > { %763 = vst [vmem:[%s1357_s7 + $0x40] sm:$0xff] %v747_v32 }
 0x1fa   : > { %764 = vst [vmem:[%s1357_s7 + $0x48] sm:$0xff] %v748_v30  ;;  %v737_v9 = vpop.permute.xlu0 %736 }
 0x1fb   : > { %v753_v5 = vmul.f32 %v737_v9, %v1049_v40  ;;  %v754_v6 = vmul.f32 %v737_v9, %v1052_v41 }
 0x1fd   : > { %769 = vst [vmem:[%s1357_s7 + $0x70] sm:$0xff] %v753_v5 }
 0x1fe   : > { %770 = vst [vmem:[%s1357_s7 + $0x78] sm:$0xff] %v754_v6  ;;  %v732_v10 = vpop.permute.xlu1 %731 }
 0x1ff   : > { %v751_v20 = vmul.f32 %v732_v10, %v1021_v27  ;;  %v752_v52 = vmul.f32 %v732_v10, %v1024_v28 }
 0x201   : > { %767 = vst [vmem:[%s1357_s7 + $0x60] sm:$0xff] %v751_v20 }
 0x202   : > { %768 = vst [vmem:[%s1357_s7 + $0x68] sm:$0xff] %v752_v52 }
 0x203 PF: > { %s15_s18 = sadd.s32 1, %s913_s18  }
 0x204   : > { %p12_p4 = scmp.ge.s32.totalorder %s15_s18, 4  }
 0x206   :  { %14 = sbr.rel (!%p12_p4) target bundleno = 1 (0x1), region = 70 }

</bundles_post_ra>
